<compile_context>
chip_gen: v6e
topology: v6e:2x2x1
jax: 0.10.0
libtpu: 0.0.40
codegen_flags: <defaults>
</compile_context>

<pallas_src>
import functools

import jax
import jax.numpy as jnp
from jax.experimental import pallas as pl
from jax.experimental.pallas import tpu as pltpu

LANE = 128      # vreg lane width
SUBLANE = 8     # vreg sublane count (f32)


def _round_up(n, m):
    return ((n + m - 1) // m) * m


def _pad2(a, rows, cols):
    r, c = a.shape
    if r == rows and c == cols:
        return a
    return jnp.pad(a, ((0, rows - r), (0, cols - c)))


def _make_decoder_kernel(d_in, n_layers, compute_dtype):
    """Fused MLP over one (tb, d_in) batch tile.

    Layer 0 (contraction dim = d_in, tiny) is d_in broadcast multiply-adds on
    the VPU in f32.  Remaining layers are 128x128-padded MXU matmuls with
    inputs in `compute_dtype` and f32 accumulation.  Bias add / ReLU in f32.
    The final store slices the padded result down to the native output width.
    """

    def kernel(x_ref, *refs):
        o_ref = refs[-1]
        wbs = refs[:-1]

        # ---- layer 0: x @ W0 + b0, ReLU (VPU, exact f32) ----
        w0_ref, b0_ref = wbs[0], wbs[1]
        xv = x_ref[...].astype(jnp.float32)          # (tb, d_in)
        h = b0_ref[...]                              # (1, h0_p), broadcasts
        for k in range(d_in):                        # d_in is tiny (3 or 11)
            h = h + xv[:, k:k + 1] * w0_ref[k:k + 1, :]
        h = jnp.maximum(h, 0.0)                      # (tb, h0_p) f32

        # ---- layers 1..n-1: MXU matmuls, f32 accumulate ----
        for i in range(1, n_layers):
            w_ref, b_ref = wbs[2 * i], wbs[2 * i + 1]
            h = jnp.dot(h.astype(compute_dtype), w_ref[...],
                        preferred_element_type=jnp.float32) + b_ref[...]
            if i < n_layers - 1:
                h = jnp.maximum(h, 0.0)

        # Store only the native output lanes (o_ref is (tb, d_out)).
        o_ref[...] = h[:, :o_ref.shape[-1]].astype(o_ref.dtype)

    return kernel


@functools.partial(jax.jit, static_argnames=("tile_b", "compute_dtype"))
def _decoder_forward_impl(x, params, *, tile_b, compute_dtype):
    B, d_in = x.shape
    n_layers = len(params)
    dims = [d_in] + [w.shape[1] for (w, _) in params]
    d_out = dims[-1]

    # Pad every layer's output width to 128 lanes (weights/biases are tiny and
    # stay VMEM-resident); the input keeps its native width d_in.
    pdims = [d_in] + [_round_up(d, LANE) for d in dims[1:]]

    flat = [x]
    for i, (w, b) in enumerate(params):
        wp = _pad2(w, pdims[i], pdims[i + 1])
        bp = _pad2(b, 1, pdims[i + 1])
        if i >= 1:                        # MXU layers take compute_dtype inputs
            wp = wp.astype(compute_dtype)
        flat += [wp, bp]                  # w0/b0 stay f32 (VPU layer)

    # Batch tiling.  Large tiles amortize per-grid-step overhead; cap so there
    # are >= 2 grid steps when possible (feeds both TensorCores on v7x).
    tb = min(tile_b, max(SUBLANE, _round_up(pl.cdiv(B, 2), SUBLANE)))
    n_tiles = pl.cdiv(B, tb)   # ragged last block handled by Pallas masking

    const = lambda i: (0, 0)   # resident weights/biases: same block every step
    in_specs = [pl.BlockSpec((tb, d_in), lambda i: (i, 0))]   # x: streamed
    for i in range(n_layers):
        in_specs.append(pl.BlockSpec((pdims[i], pdims[i + 1]), const))
        in_specs.append(pl.BlockSpec((1, pdims[i + 1]), const))

    # Advisory cost: padded (actually executed) flops, real streamed bytes.
    mxu_flops = 2 * B * sum(pdims[i] * pdims[i + 1] for i in range(1, n_layers))
    vpu_flops = 2 * B * d_in * pdims[1]
    param_bytes = sum(int(a.size) * a.dtype.itemsize for a in flat[1:])
    cost = pl.CostEstimate(
        flops=int(mxu_flops + vpu_flops),
        transcendentals=0,
        bytes_accessed=int(B * d_in * 4 + B * d_out * 4 + param_bytes),
    )

    kernel = _make_decoder_kernel(d_in, n_layers, compute_dtype)

    return pl.pallas_call(
        kernel,
        out_shape=jax.ShapeDtypeStruct((B, d_out), jnp.float32),
        grid=(n_tiles,),
        in_specs=in_specs,
        out_specs=pl.BlockSpec((tb, d_out), lambda i: (i, 0)),
        compiler_params=pltpu.CompilerParams(
            dimension_semantics=("parallel",)),   # megacore-shard batch on v7x
        cost_estimate=cost,
    )(*flat)


def decoder_forward(x, params, *, tile_b=2048, compute_dtype=jnp.bfloat16):
    """Decoder forward. params = [(W0,b0),(W1,b1),...], W as (in,out)."""
    return _decoder_forward_impl(x, params, tile_b=tile_b,
                                 compute_dtype=compute_dtype)


def init_decoder_params(key, latent_space_dim, hidden_layer_dim, cond=False):
    """Deterministic init mirroring the PyTorch __init__.

    Linear weights: kaiming_normal_ (std = sqrt(2 / fan_in)).
    Linear biases: PyTorch default U(-1/sqrt(fan_in), 1/sqrt(fan_in)).
    Weights returned as (in_features, out_features).
    """
    cond = int(cond)
    dims = [latent_space_dim + 8 * cond] + list(hidden_layer_dim) + [48]
    params = []
    for i in range(len(dims) - 1):
        fan_in, fan_out = dims[i], dims[i + 1]
        key, kw, kb = jax.random.split(key, 3)
        std = (2.0 / fan_in) ** 0.5
        w = jax.random.normal(kw, (fan_in, fan_out), jnp.float32) * std
        bound = 1.0 / (fan_in ** 0.5)
        b = jax.random.uniform(kb, (1, fan_out), jnp.float32,
                               minval=-bound, maxval=bound)
        params.append((w, b))
    return params


def reference_forward(x, params, compute_dtype=jnp.float32):
    """Pure-JAX reference matching the PyTorch forward and the kernel's
    mixed-precision scheme (layer 0 always f32; later layers take
    compute_dtype inputs with f32 accumulation)."""
    n = len(params)
    h = x
    for i, (w, b) in enumerate(params):
        lhs = h if i == 0 else h.astype(compute_dtype)
        rhs = w if i == 0 else w.astype(compute_dtype)
        h = jnp.dot(lhs, rhs, preferred_element_type=jnp.float32,
                    precision=jax.lax.Precision.HIGHEST) + b
        if i < n - 1:
            h = jnp.maximum(h, 0.0)
    return h


if __name__ == "__main__":
    latent_space_dim = 3
    hidden_layer_dim = [32, 32]   # two hidden layers (module takes a list)

    key = jax.random.PRNGKey(0)
    key, kx = jax.random.split(key)
    params = init_decoder_params(key, latent_space_dim, hidden_layer_dim,
                                 cond=False)

    # 1) f32 path, tiny batch (single grid tile).
    x = jax.random.normal(kx, (8, latent_space_dim), jnp.float32)
    out = jax.block_until_ready(
        decoder_forward(x, params, compute_dtype=jnp.float32))
    ref = reference_forward(x, params)
    assert out.shape == (8, 48), out.shape
    assert jnp.allclose(out, ref, atol=5e-4, rtol=5e-4), (
        float(jnp.max(jnp.abs(out - ref))))

    # 2) f32 path, multi-tile grid with a ragged last block.
    key, kx2 = jax.random.split(key)
    x_big = jax.random.normal(kx2, (600, latent_space_dim), jnp.float32)
    out_big = jax.block_until_ready(
        decoder_forward(x_big, params, compute_dtype=jnp.float32))
    ref_big = reference_forward(x_big, params)
    assert out_big.shape == (600, 48), out_big.shape
    assert jnp.allclose(out_big, ref_big, atol=5e-4, rtol=5e-4), (
        float(jnp.max(jnp.abs(out_big - ref_big))))

    # 3) default bf16-MXU-input path (f32 accumulate) vs bf16-mirrored ref.
    out_bf16 = jax.block_until_ready(decoder_forward(x_big, params))
    ref_bf16 = reference_forward(x_big, params, compute_dtype=jnp.bfloat16)
    assert out_bf16.shape == (600, 48), out_bf16.shape
    assert jnp.allclose(out_bf16, ref_bf16, atol=3e-2, rtol=3e-2), (
        float(jnp.max(jnp.abs(out_bf16 - ref_bf16))))

    print("KERNEL_OK")
</pallas_src>

<mosaic_0001>
module attributes {stable_mosaic.version = 11 : i64} {
  func.func @kernel(%arg0: i32, %arg1: memref<8x3xf32, #tpu.memory_space<vmem>>, %arg2: memref<3x128xf32, #tpu.memory_space<vmem>>, %arg3: memref<1x128xf32, #tpu.memory_space<vmem>>, %arg4: memref<128x128xf32, #tpu.memory_space<vmem>>, %arg5: memref<1x128xf32, #tpu.memory_space<vmem>>, %arg6: memref<128x128xf32, #tpu.memory_space<vmem>>, %arg7: memref<1x128xf32, #tpu.memory_space<vmem>>, %arg8: memref<8x48xf32, #tpu.memory_space<vmem>>) attributes {dimension_semantics = [#tpu.dimension_semantics<parallel>], iteration_bounds = array<i64: 1>, scalar_prefetch = 0 : i64, scratch_operands = 0 : i64, tpu.core_type = #tpu.core_type<tc>, window_params = [{transform_indices = @transform_0, window_bounds = array<i64: 8, 3>}, {pipeline_mode = #tpu.pipeline_mode<synchronous>, transform_indices = @transform_1, window_bounds = array<i64: 3, 128>}, {pipeline_mode = #tpu.pipeline_mode<synchronous>, transform_indices = @transform_2, window_bounds = array<i64: 1, 128>}, {pipeline_mode = #tpu.pipeline_mode<synchronous>, transform_indices = @transform_3, window_bounds = array<i64: 128, 128>}, {pipeline_mode = #tpu.pipeline_mode<synchronous>, transform_indices = @transform_4, window_bounds = array<i64: 1, 128>}, {pipeline_mode = #tpu.pipeline_mode<synchronous>, transform_indices = @transform_5, window_bounds = array<i64: 128, 128>}, {pipeline_mode = #tpu.pipeline_mode<synchronous>, transform_indices = @transform_6, window_bounds = array<i64: 1, 128>}, {transform_indices = @transform_7, window_bounds = array<i64: 8, 48>}]} {
    %c0 = arith.constant 0 : index
    %c0_0 = arith.constant 0 : index
    %0 = vector.load %arg1[%c0, %c0_0] : memref<8x3xf32, #tpu.memory_space<vmem>>, vector<8x3xf32>
    %c0_1 = arith.constant 0 : index
    %c0_2 = arith.constant 0 : index
    %1 = vector.load %arg3[%c0_1, %c0_2] : memref<1x128xf32, #tpu.memory_space<vmem>>, vector<1x128xf32>
    %2 = vector.extract_strided_slice %0 {offsets = [0, 0], sizes = [8, 1], strides = [1, 1]} : vector<8x3xf32> to vector<8x1xf32>
    %c0_3 = arith.constant 0 : index
    %c0_4 = arith.constant 0 : index
    %3 = vector.load %arg2[%c0_3, %c0_4] : memref<3x128xf32, #tpu.memory_space<vmem>>, vector<1x128xf32>
    %4 = vector.broadcast %2 : vector<8x1xf32> to vector<8x128xf32>
    %5 = vector.broadcast %3 : vector<1x128xf32> to vector<8x128xf32>
    %6 = arith.mulf %4, %5 : vector<8x128xf32>
    %7 = vector.broadcast %1 : vector<1x128xf32> to vector<8x128xf32>
    %8 = arith.addf %7, %6 : vector<8x128xf32>
    %9 = vector.extract_strided_slice %0 {offsets = [0, 1], sizes = [8, 1], strides = [1, 1]} : vector<8x3xf32> to vector<8x1xf32>
    %c1 = arith.constant 1 : index
    %c0_5 = arith.constant 0 : index
    %10 = vector.load %arg2[%c1, %c0_5] : memref<3x128xf32, #tpu.memory_space<vmem>>, vector<1x128xf32>
    %11 = vector.broadcast %9 : vector<8x1xf32> to vector<8x128xf32>
    %12 = vector.broadcast %10 : vector<1x128xf32> to vector<8x128xf32>
    %13 = arith.mulf %11, %12 : vector<8x128xf32>
    %14 = arith.addf %8, %13 : vector<8x128xf32>
    %15 = vector.extract_strided_slice %0 {offsets = [0, 2], sizes = [8, 1], strides = [1, 1]} : vector<8x3xf32> to vector<8x1xf32>
    %c2 = arith.constant 2 : index
    %c0_6 = arith.constant 0 : index
    %16 = vector.load %arg2[%c2, %c0_6] : memref<3x128xf32, #tpu.memory_space<vmem>>, vector<1x128xf32>
    %17 = vector.broadcast %15 : vector<8x1xf32> to vector<8x128xf32>
    %18 = vector.broadcast %16 : vector<1x128xf32> to vector<8x128xf32>
    %19 = arith.mulf %17, %18 : vector<8x128xf32>
    %20 = arith.addf %14, %19 : vector<8x128xf32>
    %cst = arith.constant 0.000000e+00 : f32
    %21 = vector.broadcast %cst : f32 to vector<8x128xf32>
    %22 = arith.maximumf %20, %21 : vector<8x128xf32>
    %c0_7 = arith.constant 0 : index
    %c0_8 = arith.constant 0 : index
    %23 = vector.load %arg4[%c0_7, %c0_8] : memref<128x128xf32, #tpu.memory_space<vmem>>, vector<128x128xf32>
    %cst_9 = arith.constant dense<0.000000e+00> : vector<8x128xf32>
    %24 = tpu.matmul %22, %23, %cst_9 {dimension_numbers = #tpu.dot_dimension_numbers<[1], [0], [0], [1], [0, 0, 1, 1], [], []>} : vector<8x128xf32>, vector<128x128xf32>, vector<8x128xf32> -> vector<8x128xf32>
    %c0_10 = arith.constant 0 : index
    %c0_11 = arith.constant 0 : index
    %25 = vector.load %arg5[%c0_10, %c0_11] : memref<1x128xf32, #tpu.memory_space<vmem>>, vector<1x128xf32>
    %26 = vector.broadcast %25 : vector<1x128xf32> to vector<8x128xf32>
    %27 = arith.addf %24, %26 : vector<8x128xf32>
    %cst_12 = arith.constant 0.000000e+00 : f32
    %28 = vector.broadcast %cst_12 : f32 to vector<8x128xf32>
    %29 = arith.maximumf %27, %28 : vector<8x128xf32>
    %c0_13 = arith.constant 0 : index
    %c0_14 = arith.constant 0 : index
    %30 = vector.load %arg6[%c0_13, %c0_14] : memref<128x128xf32, #tpu.memory_space<vmem>>, vector<128x128xf32>
    %cst_15 = arith.constant dense<0.000000e+00> : vector<8x128xf32>
    %31 = tpu.matmul %29, %30, %cst_15 {dimension_numbers = #tpu.dot_dimension_numbers<[1], [0], [0], [1], [0, 0, 1, 1], [], []>} : vector<8x128xf32>, vector<128x128xf32>, vector<8x128xf32> -> vector<8x128xf32>
    %c0_16 = arith.constant 0 : index
    %c0_17 = arith.constant 0 : index
    %32 = vector.load %arg7[%c0_16, %c0_17] : memref<1x128xf32, #tpu.memory_space<vmem>>, vector<1x128xf32>
    %33 = vector.broadcast %32 : vector<1x128xf32> to vector<8x128xf32>
    %34 = arith.addf %31, %33 : vector<8x128xf32>
    %35 = vector.extract_strided_slice %34 {offsets = [0, 0], sizes = [8, 48], strides = [1, 1]} : vector<8x128xf32> to vector<8x48xf32>
    %c0_18 = arith.constant 0 : index
    %c0_19 = arith.constant 0 : index
    %36 = vector.load %arg8[%c0_18, %c0_19] : memref<8x48xf32, #tpu.memory_space<vmem>>, vector<8x48xf32>
    tpu.vector_store %arg8[%c0_18, %c0_19], %35 {strides = array<i32>} : memref<8x48xf32, #tpu.memory_space<vmem>>, vector<8x48xf32>,
    return
  }
  func.func @transform_0(%arg0: i32) -> (i32, i32) {
    %c0_i32 = arith.constant 0 : i32
    %c0_i32_0 = arith.constant 0 : i32
    return %arg0, %c0_i32 : i32, i32
  }
  func.func @transform_1(%arg0: i32) -> (i32, i32) {
    %c0_i32 = arith.constant 0 : i32
    %c0_i32_0 = arith.constant 0 : i32
    %c0_i32_1 = arith.constant 0 : i32
    return %c0_i32, %c0_i32_0 : i32, i32
  }
  func.func @transform_2(%arg0: i32) -> (i32, i32) {
    %c0_i32 = arith.constant 0 : i32
    %c0_i32_0 = arith.constant 0 : i32
    %c0_i32_1 = arith.constant 0 : i32
    return %c0_i32, %c0_i32_0 : i32, i32
  }
  func.func @transform_3(%arg0: i32) -> (i32, i32) {
    %c0_i32 = arith.constant 0 : i32
    %c0_i32_0 = arith.constant 0 : i32
    %c0_i32_1 = arith.constant 0 : i32
    return %c0_i32, %c0_i32_0 : i32, i32
  }
  func.func @transform_4(%arg0: i32) -> (i32, i32) {
    %c0_i32 = arith.constant 0 : i32
    %c0_i32_0 = arith.constant 0 : i32
    %c0_i32_1 = arith.constant 0 : i32
    return %c0_i32, %c0_i32_0 : i32, i32
  }
  func.func @transform_5(%arg0: i32) -> (i32, i32) {
    %c0_i32 = arith.constant 0 : i32
    %c0_i32_0 = arith.constant 0 : i32
    %c0_i32_1 = arith.constant 0 : i32
    return %c0_i32, %c0_i32_0 : i32, i32
  }
  func.func @transform_6(%arg0: i32) -> (i32, i32) {
    %c0_i32 = arith.constant 0 : i32
    %c0_i32_0 = arith.constant 0 : i32
    %c0_i32_1 = arith.constant 0 : i32
    return %c0_i32, %c0_i32_0 : i32, i32
  }
  func.func @transform_7(%arg0: i32) -> (i32, i32) {
    %c0_i32 = arith.constant 0 : i32
    %c0_i32_0 = arith.constant 0 : i32
    return %arg0, %c0_i32 : i32, i32
  }
}

</mosaic_0001>

<bundles_post_ra>
// kernel: _decoder_forward_impl.1
= control target key start
LH: loop header
LB: loop body
LE: loop exit
PB: predicated region body
PF: predicated region fallthrough
CT: control target
= control target key end

     0   :  { %v415_v1 = vmov 0   ;;  %v416_v2 = vmov 2   ;;  %v417_v4 = vmov 0.0   ;;  %v418_v7 = vmov 1   ;;  %s617_s0 = inlined_call_operand.vmem [shape: f32[8,3], index: 0, kind: input, shape index: {}]   ;;  %s618_s1 = inlined_call_operand.vmem [shape: f32[3,128], index: 1, kind: input, shape index: {}]   ;;  %s619_s2 = inlined_call_operand.vmem [shape: f32[1,128], index: 2, kind: input, shape index: {}]   ;;  %s620_s3 = inlined_call_operand.vmem [shape: f32[128,128], index: 3, kind: input, shape index: {}]   ;;  %s621_s4 = inlined_call_operand.vmem [shape: f32[1,128], index: 4, kind: input, shape index: {}]   ;;  %s622_s5 = inlined_call_operand.vmem [shape: f32[128,128], index: 5, kind: input, shape index: {}]   ;;  %s623_s6 = inlined_call_operand.vmem [shape: f32[1,128], index: 6, kind: input, shape index: {}]   ;;  %s624_s7 = inlined_call_operand.hbm [shape: f32[8,48], index: 7, kind: output, shape index: {}]  }
   0x1   :  { %v27_v0 = vld [vmem:[%s617_s0] sm:$0xff]  ;;  %389 = vset.pattern.permute.xlu0 %v415_v1  ;;  %391 = vset.pattern.permute.xlu1 %v416_v2  ;;  %v85_v3 = vld [vmem:[%s620_s3 + $0x78] sm:$0xff]  ;;  %v84_v5 = vld [vmem:[%s620_s3 + $0x70] sm:$0xff] }
   0x2   :  { %32 = vperm.xlu0 %389, %v27_v0   ;;  %60 = vperm.xlu1 %391, %v27_v0   ;;  %v83_v6 = vld [vmem:[%s620_s3 + $0x68] sm:$0xff] }
   0x3   :  { %313 = vmatprep.subr.mxu0 %v417_v4  ;;  %348 = vmatprep.subr.mxu1 %v417_v4 }
   0x4   :  { %314 = vmatpush3.msra.mxu0 %v85_v3 }
   0x5   :  { %315 = vmatprep.subr.mxu0 %v417_v4 }
   0x6   :  { %390 = vset.pattern.permute.xlu0 %v418_v7  ;;  %316 = vmatpush3.msra.mxu0 %v84_v5 }
   0x7   :  { %12 = vsyncpa [#allocation3], 0  ;;  %49 = vperm.xlu0 %390, %v27_v0   ;;  %317 = vmatprep.subr.mxu0 %v417_v4  ;;  %v82_v8 = vld [vmem:[%s620_s3 + $0x60] sm:$0xff]  ;;  %v81_v9 = vld [vmem:[%s620_s3 + $0x58] sm:$0xff]  ;;  %vm419_vm0 = vmmov 0   ;;  %s420_s27 = smov [#allocation2]  }
   0x8   :  { %318 = vmatpush3.msra.mxu0 %v83_v6  ;;  %345 = vmatprep.mubr.msk.f32.mxu0 %vm419_vm0, %v417_v4  ;;  %v80_v10 = vld [vmem:[%s620_s3 + $0x50] sm:$0xff]  ;;  %v179_v11 = vld [vmem:[%s622_s5 + $0x78] sm:$0xff]  ;;  %v79_v13 = vld [vmem:[%s620_s3 + $0x48] sm:$0xff]  ;;  %s265_s28 = sshll.u32 %s420_s27, 4  ;;  %vm257_vm1 = vcmask 392192   ;;  %s266_s28 = int_to_ptr.vmem [resolvable:$true] %s265_s28 }
   0x9   :  { %319 = vmatprep.subr.mxu0 %v417_v4  ;;  %v178_v12 = vld [vmem:[%s622_s5 + $0x70] sm:$0xff]  ;;  %380 = vmatprep.mubr.msk.f32.mxu1 %vm419_vm0, %v417_v4  ;;  %v177_v14 = vld [vmem:[%s622_s5 + $0x68] sm:$0xff]  ;;  %v78_v15 = vld [vmem:[%s620_s3 + $0x40] sm:$0xff]  ;;  %p398_p1 = scmp.lt.s32.totalorder %s266_s28, %s266_s28 }
   0xa   :  { %320 = vmatpush3.msra.mxu0 %v82_v8  ;;  %349 = vmatpush3.msra.mxu1 %v179_v11  ;;  %v176_v16 = vld [vmem:[%s622_s5 + $0x60] sm:$0xff]  ;;  %v77_v17 = vld [vmem:[%s620_s3 + $0x38] sm:$0xff]  ;;  %v76_v19 = vld [vmem:[%s620_s3 + $0x30] sm:$0xff] }
   0xb   :  { %321 = vmatprep.subr.mxu0 %v417_v4  ;;  %350 = vmatprep.subr.mxu1 %v417_v4  ;;  %v175_v18 = vld [vmem:[%s622_s5 + $0x58] sm:$0xff]  ;;  %v174_v20 = vld [vmem:[%s622_s5 + $0x50] sm:$0xff]  ;;  %v75_v21 = vld [vmem:[%s620_s3 + $0x28] sm:$0xff] }
   0xc   :  { %322 = vmatpush3.msra.mxu0 %v81_v9  ;;  %351 = vmatpush3.msra.mxu1 %v178_v12  ;;  %v173_v22 = vld [vmem:[%s622_s5 + $0x48] sm:$0xff]  ;;  %v74_v23 = vld [vmem:[%s620_s3 + $0x20] sm:$0xff]  ;;  %v73_v25 = vld [vmem:[%s620_s3 + $0x18] sm:$0xff] }
   0xd   :  { %323 = vmatprep.subr.mxu0 %v417_v4  ;;  %352 = vmatprep.subr.mxu1 %v417_v4  ;;  %v172_v24 = vld [vmem:[%s622_s5 + $0x40] sm:$0xff]  ;;  %v171_v26 = vld [vmem:[%s622_s5 + $0x38] sm:$0xff]  ;;  %v72_v27 = vld [vmem:[%s620_s3 + $0x10] sm:$0xff] }
   0xe   :  { %324 = vmatpush3.msra.mxu0 %v80_v10  ;;  %353 = vmatpush3.msra.mxu1 %v177_v14  ;;  %v170_v28 = vld [vmem:[%s622_s5 + $0x30] sm:$0xff]  ;;  %v71_v29 = vld [vmem:[%s620_s3 + $0x8] sm:$0xff]  ;;  %v70_v31 = vld [vmem:[%s620_s3] sm:$0xff] }
   0xf   :  { %325 = vmatprep.subr.mxu0 %v417_v4  ;;  %354 = vmatprep.subr.mxu1 %v417_v4  ;;  %v169_v30 = vld [vmem:[%s622_s5 + $0x28] sm:$0xff]  ;;  %v168_v32 = vld [vmem:[%s622_s5 + $0x20] sm:$0xff]  ;;  %v167_v33 = vld [vmem:[%s622_s5 + $0x18] sm:$0xff] }
  0x10   :  { %326 = vmatpush3.msra.mxu0 %v79_v13  ;;  %355 = vmatpush3.msra.mxu1 %v176_v16  ;;  %v273_v34 = vld [vmem:[%s618_s1] ss:$0 sm:$0xff]  ;;  %v275_v38 = vld [vmem:[%s618_s1 + $0x1] ss:$0 sm:$0xff]  ;;  %v276_v39 = vld [vmem:[%s618_s1 + $0x2] ss:$0 sm:$0xff] }
  0x11   :  { %327 = vmatprep.subr.mxu0 %v417_v4  ;;  %356 = vmatprep.subr.mxu1 %v417_v4  ;;  %v274_v37 = vld [vmem:[%s619_s2] ss:$0 sm:$0xff]  ;;  %v166_v48 = vld [vmem:[%s622_s5 + $0x10] sm:$0xff]  ;;  %v165_v49 = vld [vmem:[%s622_s5 + $0x8] sm:$0xff] }
  0x12   :  { %328 = vmatpush3.msra.mxu0 %v78_v15  ;;  %357 = vmatpush3.msra.mxu1 %v175_v18  ;;  %v164_v50 = vld [vmem:[%s622_s5] sm:$0xff]  ;;  %s393_s5 = scalar_lea.vmem %s266_s28, 128 }
  0x13   :  { %329 = vmatprep.subr.mxu0 %v417_v4  ;;  %358 = vmatprep.subr.mxu1 %v417_v4  ;;  %v277_v51 = vld [vmem:[%s621_s4] ss:$0 sm:$0xff]  ;;  %p394_p0 = scmp.ne.s32.totalorder %s266_s28, %s393_s5  ;;  %p399_p2 = scmp.lt.s32.totalorder %s393_s5, %s393_s5 }
  0x14   :  { %330 = vmatpush3.msra.mxu0 %v77_v17  ;;  %359 = vmatpush3.msra.mxu1 %v174_v20  ;;  %v278_v56 = vld [vmem:[%s623_s6] ss:$0 sm:$0xff] }
  0x15   :  { %331 = vmatprep.subr.mxu0 %v417_v4  ;;  %360 = vmatprep.subr.mxu1 %v417_v4  ;;  %p400_p3 = por %p399_p2, %p398_p1 }
  0x16   :  { %332 = vmatpush3.msra.mxu0 %v76_v19  ;;  %361 = vmatpush3.msra.mxu1 %v173_v22 }
  0x17   :  { %333 = vmatprep.subr.mxu0 %v417_v4  ;;  %362 = vmatprep.subr.mxu1 %v417_v4  ;;  %p401_p4 = pnand %p400_p3, %p394_p0 }
  0x18   :  { %334 = vmatpush3.msra.mxu0 %v75_v21  ;;  %363 = vmatpush3.msra.mxu1 %v172_v24 }
  0x19   :  { %335 = vmatprep.subr.mxu0 %v417_v4  ;;  %364 = vmatprep.subr.mxu1 %v417_v4 }
  0x1a   :  { %336 = vmatpush3.msra.mxu0 %v74_v23  ;;  %365 = vmatpush3.msra.mxu1 %v171_v26 }
  0x1b   :  { %337 = vmatprep.subr.mxu0 %v417_v4  ;;  %366 = vmatprep.subr.mxu1 %v417_v4 }
  0x1c   :  { %338 = vmatpush3.msra.mxu0 %v73_v25  ;;  %367 = vmatpush3.msra.mxu1 %v170_v28 }
  0x1d   :  { %339 = vmatprep.subr.mxu0 %v417_v4  ;;  %368 = vmatprep.subr.mxu1 %v417_v4 }
  0x1e   :  { %340 = vmatpush3.msra.mxu0 %v72_v27  ;;  %369 = vmatpush3.msra.mxu1 %v169_v30 }
  0x1f   :  { %341 = vmatprep.subr.mxu0 %v417_v4  ;;  %370 = vmatprep.subr.mxu1 %v417_v4 }
  0x20   :  { %342 = vmatpush3.msra.mxu0 %v71_v29  ;;  %371 = vmatpush3.msra.mxu1 %v168_v32 }
  0x21   :  { %343 = vmatprep.subr.mxu0 %v417_v4  ;;  %372 = vmatprep.subr.mxu1 %v417_v4 }
  0x22   :  { %344 = vmatpush3.msra.mxu0 %v70_v31  ;;  %392 = vset.pattern.permute.xlu0 %v416_v2 }
  0x23   :  { %373 = vmatpush3.msra.mxu1 %v167_v33 }
  0x24   :  { %374 = vmatprep.subr.mxu1 %v417_v4 }
  0x25   :  { %375 = vmatpush3.msra.mxu1 %v166_v48 }
  0x26   :  { %376 = vmatprep.subr.mxu1 %v417_v4 }
  0x27   :  { %377 = vmatpush3.msra.mxu1 %v165_v49 }
  0x28   :  { %378 = vmatprep.subr.mxu1 %v417_v4 }
  0x29   :  { %379 = vmatpush3.msra.mxu1 %v164_v50 }
  0x7d   :  { %v33_v35 = vpop.permute.xlu0 %32  ;;  %v61_v40 = vpop.permute.xlu1 %60 }
  0x7e   :  { %v39_v36 = vmul.f32 %v273_v34, %v33_v35  ;;  %v67_v44 = vmul.f32 %v276_v39, %v61_v40 }
  0x80   :  { %v46_v42 = vadd.f32 %v274_v37, %v39_v36 }
  0x82   :  { %v50_v41 = vpop.permute.xlu0 %49 }
  0x83   :  { %v56_v43 = vmul.f32 %v275_v38, %v50_v41 }
  0x85   :  { %v57_v45 = vadd.f32 %v56_v43, %v46_v42 }
  0x87   :  { %v68_v46 = vadd.f32 %v67_v44, %v57_v45 }
  0x89   :  { %v69_v47 = vmax.f32 %v68_v46, 0.0 }
  0x8b   :  { %346 = vmatmul.mubr.f32.vlgmr.msra.gmra.mxu0 %v69_v47 }
 0x14b   :  { %v159_v52 = vpop.f32.mrf.mxu0 }
 0x14c   :  { %v160_v53 = vadd.f32 %v277_v51, %v159_v52 }
 0x14d   :  { %v347_v54 = vpop.f32.mrf.mxu0 }
 0x14e   :  { %v163_v55 = vmax.f32 %v160_v53, 0.0 }
 0x150   :  { %381 = vmatmul.mubr.f32.vlgmr.msra.gmra.mxu1 %v163_v55 }
 0x210   :  { %v253_v57 = vpop.f32.mrf.mxu1 }
 0x211   :  { %v254_v58 = vadd.f32 %v278_v56, %v253_v57 }
 0x212   :  { %v382_v59 = vpop.f32.mrf.mxu1 }
 0x213   :  { %258 = vst.msk [vmem:[#allocation2] sm:$0xff] %vm257_vm1, %v254_v58 }
 0x214   :  { %404 = shalt.err (!%p401_p4)
}
 0x215   :  { %268 = dma.vmem_to_hbm [thread:$0]  %s266_s28, 128, %s624_s7, [#allocation3]  }
 0x216   :  { %413 = dma.done.wait [#allocation3], 128  }
 0x217   :  { %414 = vsyncadd [#allocation3], 4294967168 }
 0x218   :  { %272 = vsyncpa [#allocation3], 1 }

</bundles_post_ra>
